<compile_context>
chip_gen: v7x
topology: tpu7x:2x2x1
jax: 0.10.0
libtpu: 0.0.40
codegen_flags: <defaults>
</compile_context>

<pallas_src>
import functools

import jax
import jax.numpy as jnp
from jax import lax
from jax.experimental import pallas as pl
from jax.experimental.pallas import tpu as pltpu


def _round_up(x: int, m: int) -> int:
    return ((x + m - 1) // m) * m


def _vmem_capacity_bytes(default: int = 64 * 1024 * 1024) -> int:
    """Physical VMEM per core; conservative (v7x-sized) default if unknown."""
    try:
        info = pltpu.get_tpu_info()
    except Exception:
        return default
    for attr in ("vmem_capacity_bytes", "vmem_size_bytes", "vmem_bytes"):
        v = getattr(info, attr, None)
        if v is None:
            continue
        try:
            v = int(v)
        except Exception:
            continue
        if v > 0:
            return v
    return default


def _largest_dividing_tile(n_pad: int, target: int) -> int:
    """Largest multiple of 128 that divides n_pad and is <= target (min 128)."""
    t = min(target, n_pad)
    t = max((t // 128) * 128, 128)
    while t > 128 and n_pad % t != 0:
        t -= 128
    return t


def _fc_norm_kernel(x_ref, wf_ref, wp_ref, bf_ref, bp_ref, feat_ref, pos_ref):
    # x_ref:    (1, c, TR) channel-major input tile
    # wf/wp:    (c, c) PyTorch-layout weight halves (out_ch, in_ch)
    # bf/bp:    (c, 1) bias columns
    # feat_ref: (1, TR, c) token-major   (for the stage-2 gather matmul)
    # pos_ref:  (1, c, TR) channel-major (for the stage-2 similarity matmul)
    x_ct = x_ref[0]                                              # (c, TR)
    feat_ct = jnp.dot(wf_ref[...], x_ct,
                      preferred_element_type=jnp.float32) + bf_ref[...]
    pos_ct = jnp.dot(wp_ref[...], x_ct,
                     preferred_element_type=jnp.float32) + bp_ref[...]
    # F.normalize(p=2, dim=-1): pos / max(||pos||, 1e-12), via EUP rsqrt.
    sumsq = jnp.sum(pos_ct * pos_ct, axis=0, keepdims=True)     # (1, TR)
    pos_ct = pos_ct * lax.rsqrt(jnp.maximum(sumsq, 1e-24))
    pos_ref[0] = pos_ct.astype(pos_ref.dtype)
    feat_ref[0] = feat_ct.T.astype(feat_ref.dtype)              # one-time transpose


def _topk_attn_kernel(pos_ref, feat_ref, o_ref, *, k: int, tq: int, n_valid: int):
    # pos_ref:  (1, c, Np) channel-major positions, resident across q tiles
    # feat_ref: (1, Np, c) token-major features,   resident across q tiles
    # o_ref:    (1, c, TQ) channel-major output tile (lane-dense store)
    n_pad = pos_ref.shape[2]
    q_start = pl.multiple_of(pl.program_id(1) * tq, 128)

    pos_all = pos_ref[0]                                         # (c, Np)
    pos_q = pos_ref[0, :, pl.ds(q_start, tq)].T                  # (TQ, c) small xpose

    # sim[q, j] = <pos_q[q], pos[:, j]> — natural contraction on both operands
    # (no per-step transpose of the big resident block).
    sim = jnp.dot(pos_q, pos_all, preferred_element_type=jnp.float32)  # (TQ, Np)

    cols = lax.broadcasted_iota(jnp.int32, (1, n_pad), 1)        # (1, Np) only
    if n_valid < n_pad:
        # Padded columns can never win: real sims lie in [-1, 1] > -3.
        sim = jnp.where(cols < n_valid, sim, jnp.float32(-3.0))

    # Iterative sorted top-k (k small & static -> unrolled) with the
    # softmax-weighted one-hot selection matrix accumulated in-loop.
    cur = sim
    num = None        # (TQ, Np): sum_i exp(v_i - v_0) * onehot_i
    onehot0 = None    # (TQ, Np): argmax one-hot (for attn[:, :, 0] -= 1)
    denom = None      # (TQ, 1):  softmax denominator
    v0 = None         # (TQ, 1):  top-1 similarity
    for i in range(k):
        m = jnp.max(cur, axis=-1, keepdims=True)                 # (TQ, 1)
        masked = jnp.where(cur == m, cols, jnp.int32(n_pad))     # (TQ, Np)
        idx = jnp.min(masked, axis=-1, keepdims=True)            # (TQ, 1)
        hit = masked == idx                                      # one True per row
        if i == 0:
            v0 = m
            onehot0 = jnp.where(hit, jnp.float32(1.0), jnp.float32(0.0))
            num = onehot0                                        # exp(0) = 1
            denom = jnp.ones_like(m)
        else:
            e = jnp.exp(m - v0)                                  # (TQ, 1)
            num = num + jnp.where(hit, e, jnp.float32(0.0))
            denom = denom + e
        if i + 1 < k:
            # Knock out the selected entry (unit-normalized sims >= -1 > -3).
            cur = jnp.where(hit, jnp.float32(-3.0), cur)

    inv = pl.reciprocal(denom, approx=False)                     # (TQ, 1)
    wmat = num * inv - onehot0                                   # (TQ, Np)

    # Fused gather: one attn-weighted selection matmul (natural contraction).
    out = jnp.dot(wmat, feat_ref[0], preferred_element_type=jnp.float32)  # (TQ, c)
    o_ref[0] = out.T.astype(o_ref.dtype)                         # (c, TQ)


def gnni_forward(x, w_pt, bias_pt, k, *, tq_target=None, tr_target=1024):
    """GNNI forward.

    x:       (b, c, h, w) NCHW input.
    w_pt:    (2c, c) nn.Linear(dim, 2*dim) weight (PyTorch layout).
    bias_pt: (2c,)   nn.Linear bias.
    Returns (b, c, h, w).
    """
    b, c, h, w_sp = x.shape
    n = h * w_sp
    assert k <= n

    # ---- generation-aware tiling / VMEM budget ------------------------------
    vmem_cap = _vmem_capacity_bytes()
    if vmem_cap >= 100 * 1024 * 1024:      # v5e / v6e: 128 MiB physical VMEM
        vmem_limit = 100 * 1024 * 1024
        default_tq = 512
    else:                                  # v7x (64 MiB) or unknown
        vmem_limit = 48 * 1024 * 1024
        default_tq = 128
    if tq_target is None:
        tq_target = default_tq

    n_pad = _round_up(n, 128)

    # Stage-2 fit: double-buffered residents + ~7 live (TQ, Np) f32 temporaries
    # + output double-buffer must stay comfortably under the scoped limit.
    resident = 2 * 2 * n_pad * c * 4
    per_tq = (7 * n_pad + 2 * c) * 4
    avail = int(0.8 * vmem_limit) - resident
    if avail > per_tq * 128:
        tq_cap = max(128, (avail // per_tq) // 128 * 128)
    else:
        tq_cap = 128
    tq = _largest_dividing_tile(n_pad, min(tq_target, tq_cap))

    tr = _largest_dividing_tile(n_pad, tr_target)
    while tr > 128 and (12 * c * tr + 4 * c * c) * 4 > int(0.8 * vmem_limit):
        tr = _largest_dividing_tile(n_pad, tr - 128)

    # ---- input prep (stays channel-major; lane padding only) ---------------
    x_cn = x.reshape(b, c, n)
    if n_pad > n:
        x_cn = jnp.pad(x_cn, ((0, 0), (0, 0), (0, n_pad - n)))

    # nn.Linear: y = x @ W.T + b with W = (2c, c).  In the channel-major
    # formulation y_ct = W @ x_ct + b_col, so the PyTorch weight is used as-is.
    w_feat = jnp.asarray(w_pt[:c], dtype=x.dtype)                # (c, c)
    w_pos = jnp.asarray(w_pt[c:], dtype=x.dtype)                 # (c, c)
    b_feat = jnp.asarray(bias_pt[:c].reshape(c, 1), dtype=jnp.float32)
    b_pos = jnp.asarray(bias_pt[c:].reshape(c, 1), dtype=jnp.float32)

    # ---- Stage 1: fc + split + l2-normalize (batch x row tiles) ------------
    feat, pos = pl.pallas_call(
        _fc_norm_kernel,
        out_shape=(jax.ShapeDtypeStruct((b, n_pad, c), jnp.float32),   # token-major
                   jax.ShapeDtypeStruct((b, c, n_pad), jnp.float32)),  # channel-major
        grid_spec=pltpu.PrefetchScalarGridSpec(
            num_scalar_prefetch=0,
            grid=(b, n_pad // tr),
            in_specs=[
                pl.BlockSpec((1, c, tr), lambda i, j: (i, 0, j)),
                pl.BlockSpec((c, c), lambda i, j: (0, 0)),
                pl.BlockSpec((c, c), lambda i, j: (0, 0)),
                pl.BlockSpec((c, 1), lambda i, j: (0, 0)),
                pl.BlockSpec((c, 1), lambda i, j: (0, 0)),
            ],
            out_specs=[
                pl.BlockSpec((1, tr, c), lambda i, j: (i, j, 0)),
                pl.BlockSpec((1, c, tr), lambda i, j: (i, 0, j)),
            ]),
        compiler_params=pltpu.CompilerParams(
            dimension_semantics=("parallel", "parallel"),
            vmem_limit_bytes=vmem_limit),
    )(x_cn, w_feat, w_pos, b_feat, b_pos)

    # ---- Stage 2: similarity + top-k + fused gather (query row tiles) ------
    # pos/feat stay fully resident across the q-tile axis; the query tile is
    # sliced out of the resident pos block in-kernel (no duplicate DMA stream).
    out_cn = pl.pallas_call(
        functools.partial(_topk_attn_kernel, k=k, tq=tq, n_valid=n),
        out_shape=jax.ShapeDtypeStruct((b, c, n_pad), x.dtype),
        grid_spec=pltpu.PrefetchScalarGridSpec(
            num_scalar_prefetch=0,
            grid=(b, n_pad // tq),
            in_specs=[
                pl.BlockSpec((1, c, n_pad), lambda i, j: (i, 0, 0)),   # pos (resident)
                pl.BlockSpec((1, n_pad, c), lambda i, j: (i, 0, 0)),   # feat (resident)
            ],
            out_specs=pl.BlockSpec((1, c, tq), lambda i, j: (i, 0, j)),
        ),
        compiler_params=pltpu.CompilerParams(
            dimension_semantics=("parallel", "parallel"),
            vmem_limit_bytes=vmem_limit),
    )(pos, feat)

    # Output is already channel-major NCHW: drop padded columns and reshape.
    return out_cn[:, :, :n].reshape(b, c, h, w_sp)


def gnni_reference(x, w_pt, bias_pt, k):
    """Pure-JAX reference mirroring the PyTorch forward."""
    b, c, h, w_sp = x.shape
    n = h * w_sp
    xs = jnp.transpose(x.reshape(b, c, n), (0, 2, 1))            # (b, N, c)
    fp = xs @ w_pt.T + bias_pt                                   # (b, N, 2c)
    feat, pos = fp[..., :c], fp[..., c:]
    pos = pos / jnp.maximum(
        jnp.linalg.norm(pos, axis=-1, keepdims=True), 1e-12)
    sim = pos @ jnp.swapaxes(pos, -1, -2)                        # (b, N, N)
    topv, topi = lax.top_k(sim, k)                               # (b, N, k)
    topf = feat[jnp.arange(b)[:, None, None], topi]              # (b, N, k, c)
    attn = jax.nn.softmax(topv, axis=-1)
    attn = attn.at[:, :, 0].add(-1.0)
    out = jnp.sum(attn[..., None] * topf, axis=-2)               # (b, N, c)
    return jnp.transpose(out.reshape(b, h, w_sp, c), (0, 3, 1, 2))


if __name__ == "__main__":
    # Small shapes: b=2, c=dim=8, h=w=4 (N=16), k=4.
    b, c, h, w, k = 2, 8, 4, 4, 4

    key = jax.random.PRNGKey(0)
    kx, kw, kb = jax.random.split(key, 3)

    x = jax.random.normal(kx, (b, c, h, w), dtype=jnp.float32)

    # nn.Linear(dim, 2*dim): weight (2c, c), bias (2c,), U(-1/sqrt(c), 1/sqrt(c)).
    bound = 1.0 / (c ** 0.5)
    w_pt = jax.random.uniform(kw, (2 * c, c), jnp.float32, -bound, bound)
    bias_pt = jax.random.uniform(kb, (2 * c,), jnp.float32, -bound, bound)

    out = gnni_forward(x, w_pt, bias_pt, k)
    out = jax.block_until_ready(out)

    ref = gnni_reference(x, w_pt, bias_pt, k)
    assert out.shape == (b, c, h, w)
    assert jnp.allclose(out, ref, atol=1e-5, rtol=1e-5), (
        float(jnp.max(jnp.abs(out - ref))))

    print("KERNEL_OK")
</pallas_src>

<mosaic_0001>
module attributes {stable_mosaic.version = 11 : i64} {
  func.func @_fc_norm_kernel(%arg0: i32, %arg1: i32, %arg2: memref<1x8x128xf32, #tpu.memory_space<vmem>>, %arg3: memref<8x8xf32, #tpu.memory_space<vmem>>, %arg4: memref<8x8xf32, #tpu.memory_space<vmem>>, %arg5: memref<8x1xf32, #tpu.memory_space<vmem>>, %arg6: memref<8x1xf32, #tpu.memory_space<vmem>>, %arg7: memref<1x128x8xf32, #tpu.memory_space<vmem>>, %arg8: memref<1x8x128xf32, #tpu.memory_space<vmem>>) attributes {dimension_semantics = [#tpu.dimension_semantics<parallel>, #tpu.dimension_semantics<parallel>], iteration_bounds = array<i64: 2, 1>, scalar_prefetch = 0 : i64, scratch_operands = 0 : i64, tpu.core_type = #tpu.core_type<tc>, window_params = [{transform_indices = @transform_0, window_bounds = array<i64: 1, 8, 128>}, {pipeline_mode = #tpu.pipeline_mode<synchronous>, transform_indices = @transform_1, window_bounds = array<i64: 8, 8>}, {pipeline_mode = #tpu.pipeline_mode<synchronous>, transform_indices = @transform_2, window_bounds = array<i64: 8, 8>}, {pipeline_mode = #tpu.pipeline_mode<synchronous>, transform_indices = @transform_3, window_bounds = array<i64: 8, 1>}, {pipeline_mode = #tpu.pipeline_mode<synchronous>, transform_indices = @transform_4, window_bounds = array<i64: 8, 1>}, {transform_indices = @transform_5, window_bounds = array<i64: 1, 128, 8>}, {transform_indices = @transform_6, window_bounds = array<i64: 1, 8, 128>}]} {
    %c0 = arith.constant 0 : index
    %c0_0 = arith.constant 0 : index
    %c0_1 = arith.constant 0 : index
    %0 = vector.load %arg2[%c0, %c0_0, %c0_1] : memref<1x8x128xf32, #tpu.memory_space<vmem>>, vector<1x8x128xf32>
    %1 = vector.shape_cast %0 : vector<1x8x128xf32> to vector<8x128xf32>
    %c0_2 = arith.constant 0 : index
    %c0_3 = arith.constant 0 : index
    %2 = vector.load %arg3[%c0_2, %c0_3] : memref<8x8xf32, #tpu.memory_space<vmem>>, vector<8x8xf32>
    %cst = arith.constant dense<0.000000e+00> : vector<8x128xf32>
    %3 = tpu.matmul %2, %1, %cst {dimension_numbers = #tpu.dot_dimension_numbers<[1], [0], [0], [1], [0, 0, 1, 1], [], []>} : vector<8x8xf32>, vector<8x128xf32>, vector<8x128xf32> -> vector<8x128xf32>
    %c0_4 = arith.constant 0 : index
    %c0_5 = arith.constant 0 : index
    %4 = vector.load %arg5[%c0_4, %c0_5] : memref<8x1xf32, #tpu.memory_space<vmem>>, vector<8x1xf32>
    %5 = vector.broadcast %4 : vector<8x1xf32> to vector<8x128xf32>
    %6 = arith.addf %3, %5 : vector<8x128xf32>
    %c0_6 = arith.constant 0 : index
    %c0_7 = arith.constant 0 : index
    %7 = vector.load %arg4[%c0_6, %c0_7] : memref<8x8xf32, #tpu.memory_space<vmem>>, vector<8x8xf32>
    %cst_8 = arith.constant dense<0.000000e+00> : vector<8x128xf32>
    %8 = tpu.matmul %7, %1, %cst_8 {dimension_numbers = #tpu.dot_dimension_numbers<[1], [0], [0], [1], [0, 0, 1, 1], [], []>} : vector<8x8xf32>, vector<8x128xf32>, vector<8x128xf32> -> vector<8x128xf32>
    %c0_9 = arith.constant 0 : index
    %c0_10 = arith.constant 0 : index
    %9 = vector.load %arg6[%c0_9, %c0_10] : memref<8x1xf32, #tpu.memory_space<vmem>>, vector<8x1xf32>
    %10 = vector.broadcast %9 : vector<8x1xf32> to vector<8x128xf32>
    %11 = arith.addf %8, %10 : vector<8x128xf32>
    %12 = arith.mulf %11, %11 : vector<8x128xf32>
    %cst_11 = arith.constant dense<0.000000e+00> : vector<128xf32>
    %13 = vector.multi_reduction <add>, %12, %cst_11 [0] : vector<8x128xf32> to vector<128xf32>
    %14 = vector.shape_cast %13 : vector<128xf32> to vector<1x128xf32>
    %cst_12 = arith.constant 1.000000e-24 : f32
    %15 = vector.broadcast %cst_12 : f32 to vector<1x128xf32>
    %16 = arith.maximumf %14, %15 : vector<1x128xf32>
    %17 = math.rsqrt %16 : vector<1x128xf32>
    %18 = vector.broadcast %17 : vector<1x128xf32> to vector<8x128xf32>
    %19 = arith.mulf %11, %18 : vector<8x128xf32>
    %c0_13 = arith.constant 0 : index
    %c0_14 = arith.constant 0 : index
    %c0_15 = arith.constant 0 : index
    %20 = vector.load %arg8[%c0_13, %c0_14, %c0_15] : memref<1x8x128xf32, #tpu.memory_space<vmem>>, vector<1x8x128xf32>
    %21 = vector.shape_cast %20 : vector<1x8x128xf32> to vector<8x128xf32>
    %22 = vector.shape_cast %19 : vector<8x128xf32> to vector<1x8x128xf32>
    tpu.vector_store %arg8[%c0_13, %c0_14, %c0_15], %22 {strides = array<i32>} : memref<1x8x128xf32, #tpu.memory_space<vmem>>, vector<1x8x128xf32>,
    %23 = tpu.transpose %6, [1, 0] : vector<8x128xf32> -> vector<128x8xf32>
    %c0_16 = arith.constant 0 : index
    %c0_17 = arith.constant 0 : index
    %c0_18 = arith.constant 0 : index
    %24 = vector.load %arg7[%c0_16, %c0_17, %c0_18] : memref<1x128x8xf32, #tpu.memory_space<vmem>>, vector<1x128x8xf32>
    %25 = vector.shape_cast %24 : vector<1x128x8xf32> to vector<128x8xf32>
    %26 = vector.shape_cast %23 : vector<128x8xf32> to vector<1x128x8xf32>
    tpu.vector_store %arg7[%c0_16, %c0_17, %c0_18], %26 {strides = array<i32>} : memref<1x128x8xf32, #tpu.memory_space<vmem>>, vector<1x128x8xf32>,
    return
  }
  func.func @transform_0(%arg0: i32, %arg1: i32) -> (i32, i32, i32) {
    %c0_i32 = arith.constant 0 : i32
    %c0_i32_0 = arith.constant 0 : i32
    return %arg0, %c0_i32, %arg1 : i32, i32, i32
  }
  func.func @transform_1(%arg0: i32, %arg1: i32) -> (i32, i32) {
    %c0_i32 = arith.constant 0 : i32
    %c0_i32_0 = arith.constant 0 : i32
    %c0_i32_1 = arith.constant 0 : i32
    return %c0_i32, %c0_i32_0 : i32, i32
  }
  func.func @transform_2(%arg0: i32, %arg1: i32) -> (i32, i32) {
    %c0_i32 = arith.constant 0 : i32
    %c0_i32_0 = arith.constant 0 : i32
    %c0_i32_1 = arith.constant 0 : i32
    return %c0_i32, %c0_i32_0 : i32, i32
  }
  func.func @transform_3(%arg0: i32, %arg1: i32) -> (i32, i32) {
    %c0_i32 = arith.constant 0 : i32
    %c0_i32_0 = arith.constant 0 : i32
    %c0_i32_1 = arith.constant 0 : i32
    return %c0_i32, %c0_i32_0 : i32, i32
  }
  func.func @transform_4(%arg0: i32, %arg1: i32) -> (i32, i32) {
    %c0_i32 = arith.constant 0 : i32
    %c0_i32_0 = arith.constant 0 : i32
    %c0_i32_1 = arith.constant 0 : i32
    return %c0_i32, %c0_i32_0 : i32, i32
  }
  func.func @transform_5(%arg0: i32, %arg1: i32) -> (i32, i32, i32) {
    %c0_i32 = arith.constant 0 : i32
    %c0_i32_0 = arith.constant 0 : i32
    return %arg0, %arg1, %c0_i32 : i32, i32, i32
  }
  func.func @transform_6(%arg0: i32, %arg1: i32) -> (i32, i32, i32) {
    %c0_i32 = arith.constant 0 : i32
    %c0_i32_0 = arith.constant 0 : i32
    return %arg0, %c0_i32, %arg1 : i32, i32, i32
  }
}

</mosaic_0001>

<bundles_post_ra>
// kernel: tpu_custom_call.1
= control target key start
LH: loop header
LB: loop body
LE: loop exit
PB: predicated region body
PF: predicated region fallthrough
CT: control target
= control target key end

     0   :  { %12 = vsyncpa [#allocation3], 0  ;;  %s1130_s0 = inlined_call_operand.vmem [shape: f32[2,8,128], index: 0, kind: input, shape index: {}]   ;;  %s1131_s1 = inlined_call_operand.hbm [shape: f32[8,8], index: 1, kind: input, shape index: {}]   ;;  %s1132_s2 = inlined_call_operand.vmem [shape: f32[8,8], index: 2, kind: input, shape index: {}]   ;;  %s1133_s3 = inlined_call_operand.vmem [shape: f32[8,1], index: 3, kind: input, shape index: {}]   ;;  %s1134_s4 = inlined_call_operand.vmem [shape: f32[8,1], index: 4, kind: input, shape index: {}]   ;;  %s1135_s5 = inlined_call_operand.vmem [shape: f32[2,128,8], index: 5, kind: output, shape index: {0}]   ;;  %s1136_s6 = inlined_call_operand.hbm [shape: f32[2,8,128], index: 6, kind: output, shape index: {1}]  }
   0x1   :  { %13 = vsyncpa [#allocation4], 0 }
   0x2   :  { %15 = vsyncpa [#allocation4 + $0x1], 0  ;;  %s934_s21 = smov 0   ;;  %s936_s22 = smov 0  }
   0x3   :  { %s938_s23 = smov 0   ;;  %s940_s24 = smov 0  }
   0x4   :  { %s942_s25 = smov 0   ;;  %s944_s26 = smov 0  }
   0x5 LB: > { %s678_s27 = sadd.s32 4294967295, %s892_s26   ;;  %s679_s28 = sadd.s32 4294967294, %s892_s26   ;;  %s892_s26 = sphi %s944_s26, %s21_s26   ;;  %s888_s25 = sphi %s942_s25, %s1154_s25   ;;  %s884_s24 = sphi %s940_s24, %s1153_s24   ;;  %s880_s23 = sphi %s938_s23, %s1152_s23   ;;  %s876_s22 = sphi %s936_s22, %s1151_s22   ;;  %s872_s21 = sphi %s934_s21, %s1150_s21  }
   0x6   : > { %s33_s29 = sadd.s32 1, %s888_s25  ;;  %s182_s30 = sadd.s32 1, %s880_s23 }
   0x7   : > { %p35_p0 = scmp.ge.s32.totalorder %s33_s29, 2  ;;  %p192_p1 = scmp.ne.s32.totalorder %s880_s23, %s876_s22 }
   0x8   : > { %p193_p2 = scmp.eq.s32.totalorder %s678_s27, 1  ;;  %p198_p3 = scmp.ne.s32.totalorder %s876_s22, %s872_s21 }
   0x9   : > { %s1156_s29 = smov (%p35_p0, %s33_s29), 0  ;;  %p199_p5 = scmp.eq.s32.totalorder %s679_s28, 1 }
   0xa   : > { %p974_p4 = por %p193_p2, %p192_p1  ;;  %s177_s8 = ssub.s32 %s888_s25, %s1156_s29 }
   0xb   : > { %p680_p6 = scmp.ge.s32.totalorder %s892_s26, 1  ;;  %p180_p7 = scmp.eq.s32.totalorder %s177_s8, 0 }
   0xc   : > { %s1141_s7 = scalar_select %p974_p4, 1, 0 }
   0xd   : > { %p981_p8 = por %p199_p5, %p198_p3  ;;  %p206_p9 = scmp.lt.s32.totalorder %s892_s26, 3 }
   0xe   : > { %s987_s10 = scalar_select %p180_p7, %s880_s23, %s182_s30  }
   0xf   : > { %s1142_s9 = scalar_select %p981_p8, 1, 0 }
  0x10   : > { %p989_p10 = pnand %p680_p6, %p206_p9  ;;  %p993_p11 = scmp.eq.s32.totalorder %s678_s27, 0 }
  0x11   : > { %s894_s13 = smov [#allocation2]   ;;  %s782_s18 = scalar_lea.hbm %s1131_s1, 128 }
  0x12   : > { %s1143_s11 = scalar_select %p989_p10, 1, 0 }
  0x13   : > { %s1144_s12 = scalar_select %p993_p11, 1, 0 }
  0x14   : > { %p716_p12 = pneg %p989_p10  ;;  %s219_s14 = sshll.u32 %s894_s13, 4  ;;  %s220_s14 = int_to_ptr.vmem [resolvable:$true] %s219_s14 }
  0x15   : > { %p783_p0 = scmp.ne.s32.totalorder %s1131_s1, %s782_s18  ;;  %p789_p5 = scmp.lt.u32.totalorder %s782_s18, %s1131_s1 }
  0x16   : > { %p1001_p13 = pnand %p993_p11, %p716_p12 }
  0x18   : > { %p784_p1 = pneg %p1001_p13 }
  0x1a   : > { %p785_p2 = pnand %p784_p1, %p783_p0 }
  0x1c   : > { %p786_p3 = pneg %p785_p2 }
  0x1e   : > { %p791_p6 = pnand %p789_p5, %p786_p3 }
  0x20   : > { %794 = shalt.err (!%p791_p6)
}
  0x21   : > { %s795_s30 = scalar_lea.vmem %s220_s14, 128  ;;  %p803_p8 = scmp.lt.s32.totalorder %s220_s14, %s220_s14 }
  0x22   : > { %p796_p7 = scmp.ne.s32.totalorder %s220_s14, %s795_s30  ;;  %p804_p4 = scmp.lt.s32.totalorder %s795_s30, %s795_s30 }
  0x24   : > { %p798_p9 = pnand %p796_p7, %p784_p1  ;;  %p805_p11 = por %p804_p4, %p803_p8 }
  0x26   : > { %p799_p12 = pneg %p798_p9 }
  0x28   : > { %p806_p10 = pnand %p805_p11, %p799_p12 }
  0x2a   : > { %809 = shalt.err (!%p806_p10)
}
  0x2b   : > { %719 = dma.hbm_to_vmem [thread:$0]  (!%p1001_p13), %s1131_s1, 128, %s220_s14, [#allocation3]  }
  0x2c   : > { %p1146_p0 = scmp.ne.s32.totalorder %s1143_s11, 0 }
  0x2d   : > { %p1147_p2 = scmp.ne.s32.totalorder (!%p1146_p0), %s1144_s12, 0 }
  0x2e   : > { %251 = sbr.rel (%p1146_p0) target bundleno = 466 (0x1d2), region = 40 }
  0x35   : > { %863 = dma.done.wait (%p1147_p2), [#allocation3], 128  }
  0x36   : > { %865 = vsyncadd (%p1147_p2), [#allocation3], 4294967168  ;;  %p292_p4 = scmp.lt.s32.totalorder %s884_s24, 1  ;;  %v895_v0 = vmov 0.0   ;;  %vm896_vm0 = vmmov 0   ;;  %v897_v1 = vmov 0  }
  0x37   : > { %700 = vmatprep.subr.mxu0 %v895_v0  ;;  %705 = vmatprep.subr.mxu1 %v895_v0  ;;  %vm317_vm1 = vcmask 64512   ;;  %v310_v3 = vld [vmem:[#allocation2] sm:$0xff]  ;;  %s289_s30 = sand.u32 1, %s876_s22   ;;  %p1148_p10 = scmp.ne.s32.totalorder %s1141_s7, 0 }
  0x38   : > { %s1029_s15 = scalar_select %p292_p4, %s884_s24, 1  ;;  %702 = vmatprep.mubr.msk.f32.mxu0 %vm896_vm0, %v895_v0  ;;  %707 = vmatprep.mubr.msk.f32.mxu1 %vm896_vm0, %v895_v0  ;;  %v391_v4 = vld [vmem:[%s1132_s2] sm:$0xff] }
  0x39   : > { %779 = vset.pattern.permute.xlu0 %v897_v1  ;;  %v311_v5 = vld [vmem:[%s1133_s3] sm:$0xff]  ;;  %s685_s8 = sshll.u32 %s289_s30, 3  ;;  %s540_s18 = scalar_lea.sflag [#allocation4], %s289_s30 }
  0x3a   : > { %s686_s11 = sshll.u32 %s1029_s15, 3  ;;  %314 = vperm.xlu0 %779, %v311_v5   ;;  %v392_v6 = vld [vmem:[%s1134_s4] sm:$0xff]  ;;  %s291_s13 = scalar_lea.vmem [#allocation5], %s685_s8 }
  0x3b   : > { %s298_s12 = scalar_lea.vmem %s1130_s0, %s686_s11  ;;  %s692_s11 = sshll.u32 %s884_s24, 7 }
  0x3c   : > { %v309_v2 = vld [vmem:[%s298_s12] sm:$0xff]  ;;  %s558_s14 = sshll.u32 %s291_s13, 4  ;;  %s1051_s17 = scalar_lea.hbm %s1136_s6, %s692_s11  ;;  %s559_s14 = int_to_ptr.vmem [resolvable:$true] %s558_s14 }
  0x3d   : > { %701 = vmatpush3.msra.mxu0 %v309_v2  ;;  %706 = vmatpush3.msra.mxu1 %v309_v2  ;;  %s810_s19 = scalar_lea.vmem %s559_s14, 128  ;;  %s898_s20 = smov [#allocation5]  }
  0x3e   : > { %703 = vmatmul.mubr.msk.f32.vlgmr.msra.gmra.mrb[0].mxu0 %vm317_vm1, %v310_v3  ;;  %708 = vmatmul.mubr.msk.f32.vlgmr.msra.gmra.mrb[0].mxu1 %vm317_vm1, %v391_v4  ;;  %p811_p8 = scmp.ne.s32.totalorder %s559_s14, %s810_s19  ;;  %s814_s27 = sshll.u32 %s898_s20, 4  ;;  %s815_s27 = int_to_ptr.vmem [resolvable:$false] %s814_s27 }
  0x3f   : > { %395 = vperm.xlu0 %779, %v392_v6   ;;  %s816_s28 = scalar_lea.vmem %s815_s27, 256  ;;  %p817_p1 = scmp.lt.s32.totalorder %s559_s14, %s815_s27 }
  0x40   : > { %p812_p11 = pnand %p811_p8, %p1148_p10  ;;  %p818_p3 = scmp.lt.s32.totalorder %s816_s28, %s810_s19 }
  0x42   : > { %p813_p13 = pneg %p812_p11  ;;  %p819_p5 = por %p818_p3, %p817_p1 }
  0x44   : > { %p820_p6 = pnand %p819_p5, %p813_p13 }
  0xb9   : > { %v315_v7 = vpop.permute.xlu0 %314 }
  0xbe   : > { %v396_v8 = vpop.permute.xlu0 %395 }
 0x111   : > { %v387_v9 = vpop.f32.mrb[0].mxu0  ;;  %v467_v10 = vpop.f32.mrb[0].mxu1 }
 0x112   : > { %v468_v11 = vadd.f32 %v467_v10, %v396_v8  ;;  %v704_v12 = vpop.f32.mrb[1].mxu0  ;;  %v388_v13 = vadd.f32 %v387_v9, %v315_v7  ;;  %v709_v14 = vpop.f32.mrb[1].mxu1 }
 0x114   : > { %v471_v15 = vmul.f32 %v468_v11, %v468_v11  ;;  %482 = vxpose.xlu1.b32.start.end [1/1] (short) %v388_v13, 128 }
 0x116   : > { %v472_v16 = vrot.slane %v471_v15, 4 }
 0x118   : > { %v473_v17 = vadd.f32 %v472_v16, %v471_v15 }
 0x11a   : > { %v474_v18 = vrot.slane %v473_v17, 2 }
 0x11c   : > { %v475_v19 = vadd.f32 %v474_v18, %v473_v17 }
 0x11e   : > { %v476_v20 = vrot.slane %v475_v19, 1 }
 0x120   : > { %v477_v21 = vadd.f32 %v476_v20, %v475_v19 }
 0x122   : > { %v478_v22 = vmax.f32 %v477_v21, 1e-24 }
 0x124   : > { %780 = vrsqrt.f32 %v478_v22 }
 0x12e   : > { %v781_v23 = vpop.eup %780 }
 0x12f   : > { %v480_v24 = vmul.f32 %v781_v23, %v468_v11 }
 0x131   : > { %481 = vst [vmem:[%s291_s13] sm:$0xff] %v480_v24 }
 0x132   : > { %823 = shalt.err (!%p820_p6)
}
 0x133   : > { %s824_s24 = scalar_lea.hbm %s1051_s17, 128  ;;  %s828_s13 = scalar_lea.hbm %s1136_s6, 256 }
 0x134   : > { %p825_p7 = scmp.ne.s32.totalorder %s1051_s17, %s824_s24  ;;  %p829_p0 = scmp.lt.u32.totalorder %s1051_s17, %s1136_s6 }
 0x135   : > { %p830_p2 = scmp.lt.u32.totalorder %s828_s13, %s824_s24  ;;  %p832_p8 = scmp.lt.u32.totalorder %s824_s24, %s1051_s17 }
 0x136   : > { %p826_p9 = pnand %p825_p7, %p1148_p10 }
 0x137   : > { %p831_p4 = por %p830_p2, %p829_p0 }
 0x138   : > { %p827_p12 = pneg %p826_p9 }
 0x139   : > { %p833_p11 = por %p832_p8, %p831_p4 }
 0x13b   : > { %p834_p13 = pnand %p833_p11, %p827_p12 }
 0x13d   : > { %837 = shalt.err (!%p834_p13)
}
 0x13e   : > { %714 = dma.vmem_to_hbm [thread:$0]  (%p1148_p10), %s559_s14, 128, %s1051_s17, %s540_s18  }
 0x13f   : > { %s695_s12 = sshll.u32 %s1029_s15, 7 }
 0x140   : > { %s1074_s27 = scalar_lea.vmem %s1135_s5, %s695_s12 }
 0x194   : > { %v498_v25 = vpop.trf.xlu1 }
 0x195   : > { %514 = vst.msk [vmem:[%s1074_s27] sm:$0xff] %vm317_vm1, %v498_v25 }
 0x198   : > { %v499_v26 = vpop.trf.xlu1 }
 0x199   : > { %515 = vst.msk [vmem:[%s1074_s27 + $0x8] sm:$0xff] %vm317_vm1, %v499_v26 }
 0x19c   : > { %v500_v27 = vpop.trf.xlu1 }
 0x19d   : > { %516 = vst.msk [vmem:[%s1074_s27 + $0x10] sm:$0xff] %vm317_vm1, %v500_v27 }
 0x1a0   : > { %v501_v28 = vpop.trf.xlu1 }
 0x1a1   : > { %517 = vst.msk [vmem:[%s1074_s27 + $0x18] sm:$0xff] %vm317_vm1, %v501_v28 }
 0x1a4   : > { %v502_v29 = vpop.trf.xlu1 }
 0x1a5   : > { %518 = vst.msk [vmem:[%s1074_s27 + $0x20] sm:$0xff] %vm317_vm1, %v502_v29 }
 0x1a8   : > { %v503_v30 = vpop.trf.xlu1 }
 0x1a9   : > { %519 = vst.msk [vmem:[%s1074_s27 + $0x28] sm:$0xff] %vm317_vm1, %v503_v30 }
 0x1ac   : > { %v504_v31 = vpop.trf.xlu1 }
 0x1ad   : > { %520 = vst.msk [vmem:[%s1074_s27 + $0x30] sm:$0xff] %vm317_vm1, %v504_v31 }
 0x1b0   : > { %v505_v32 = vpop.trf.xlu1 }
 0x1b1   : > { %521 = vst.msk [vmem:[%s1074_s27 + $0x38] sm:$0xff] %vm317_vm1, %v505_v32 }
 0x1b4   : > { %v506_v33 = vpop.trf.xlu1 }
 0x1b5   : > { %522 = vst.msk [vmem:[%s1074_s27 + $0x40] sm:$0xff] %vm317_vm1, %v506_v33 }
 0x1b8   : > { %v507_v34 = vpop.trf.xlu1 }
 0x1b9   : > { %523 = vst.msk [vmem:[%s1074_s27 + $0x48] sm:$0xff] %vm317_vm1, %v507_v34 }
 0x1bc   : > { %v508_v35 = vpop.trf.xlu1 }
 0x1bd   : > { %524 = vst.msk [vmem:[%s1074_s27 + $0x50] sm:$0xff] %vm317_vm1, %v508_v35 }
 0x1c0   : > { %v509_v36 = vpop.trf.xlu1 }
 0x1c1   : > { %525 = vst.msk [vmem:[%s1074_s27 + $0x58] sm:$0xff] %vm317_vm1, %v509_v36 }
 0x1c4   : > { %v510_v37 = vpop.trf.xlu1 }
 0x1c5   : > { %526 = vst.msk [vmem:[%s1074_s27 + $0x60] sm:$0xff] %vm317_vm1, %v510_v37 }
 0x1c8   : > { %v511_v38 = vpop.trf.xlu1 }
 0x1c9   : > { %527 = vst.msk [vmem:[%s1074_s27 + $0x68] sm:$0xff] %vm317_vm1, %v511_v38 }
 0x1cc   : > { %v512_v39 = vpop.trf.xlu1 }
 0x1cd   : > { %528 = vst.msk [vmem:[%s1074_s27 + $0x70] sm:$0xff] %vm317_vm1, %v512_v39 }
 0x1d0   : > { %v513_v40 = vpop.trf.xlu1 }
 0x1d1   : > { %529 = vst.msk [vmem:[%s1074_s27 + $0x78] sm:$0xff] %vm317_vm1, %v513_v40 }
 0x1d2 PF: > { %p726_p10 = scmp.ge.s32.totalorder %s892_s26, 2  ;;  %s582_s7 = sand.u32 1, %s872_s21  }
 0x1d3   : > { %p1149_p1 = scmp.ne.s32.totalorder %s1142_s9, 0  ;;  %s583_s15 = scalar_lea.sflag [#allocation4], %s582_s7 }
 0x1d5   : > { %p721_p3 = pnand %p726_p10, %p1149_p1 }
 0x1d7   : > { %867 = dma.done.wait (!%p721_p3), %s583_s15, 128  }
 0x1d8   : > { %869 = vsyncadd (!%p721_p3), %s583_s15, 4294967168  ;;  %s21_s26 = sadd.s32 1, %s892_s26   ;;  %s1150_s21 = smov %s876_s22 }
 0x1d9   : > { %p18_p5 = scmp.ge.s32.totalorder %s21_s26, 4   ;;  %s1151_s22 = smov %s880_s23 }
 0x1da   : > { %s1152_s23 = smov %s987_s10  ;;  %s1153_s24 = smov %s888_s25 }
 0x1db   : > { %s1154_s25 = smov %s1156_s29  ;;  %20 = sbr.rel (!%p18_p5) target bundleno = 5 (0x5), region = 92 }
 0x1e2   :  { %588 = vsyncpa [#allocation3], 1 }
 0x1e3   :  { %590 = vsyncpa [#allocation3 + $0x1], 1 }
 0x1e4   :  { %591 = vsyncpa [#allocation4], 1 }
 0x1e5   :  { %593 = vsyncpa [#allocation4 + $0x1], 1 }

</bundles_post_ra>
